<compile_context>
chip_gen: v6e
topology: v6e:2x2x1
jax: 0.10.0
libtpu: 0.0.40
codegen_flags: <defaults>
</compile_context>

<pallas_src>
import functools
import math

import jax
import jax.numpy as jnp
import numpy as np
from jax import lax
from jax.experimental import pallas as pl
from jax.experimental.pallas import tpu as pltpu

_F32 = jnp.float32
_BF16 = jnp.bfloat16
_NEG_BIG = -1e30  # finite mask value; avoids NaN from (-inf) - (-inf)


# ----------------------------- in-kernel helpers -----------------------------

def _layernorm(x, w, b, eps=1e-5):
    # x: (rows, C) f32, w/b: (1, C) f32
    mu = jnp.mean(x, axis=-1, keepdims=True)
    xc = x - mu
    var = jnp.mean(xc * xc, axis=-1, keepdims=True)
    return xc * lax.rsqrt(var + eps) * w + b


def _gelu_tanh(x):
    # nn.GELU(approximate='tanh'), f32
    c = math.sqrt(2.0 / math.pi)
    return 0.5 * x * (1.0 + jnp.tanh(c * (x + 0.044715 * x * x * x)))


def _const_spec(arr):
    """Full-array weight block with a constant index_map, single-buffered."""
    nd = arr.ndim
    return pl.BlockSpec(arr.shape, lambda b, t, _nd=nd: (0,) * _nd,
                        pipeline_mode=pl.Buffered(1))


QKV_WKEYS = ("ln1_w", "ln1_b", "wq", "bq", "wk", "bk", "wv", "bv")
ATTN_WKEYS = ("wo", "bo", "ln2_w", "ln2_b", "wfc", "bfc", "wfc2", "bfc2")


# --------------------------- kernel A: QKV projection ---------------------------
# grid = (B, T // tkv), both axes parallel.  Produces bf16 Q/K/V, (B, T, C),
# lane-dense; 1/sqrt(hd) folded into Q.

def qkv_kernel(x_ref, ln1w_ref, ln1b_ref,
               wq_ref, bq_ref, wk_ref, bk_ref, wv_ref, bv_ref,
               q_ref, k_ref, v_ref, *, scale):
    h = _layernorm(x_ref[0].astype(_F32), ln1w_ref[...], ln1b_ref[...]).astype(_BF16)
    q = (jnp.dot(h, wq_ref[...], preferred_element_type=_F32) + bq_ref[...]) * scale
    k = jnp.dot(h, wk_ref[...], preferred_element_type=_F32) + bk_ref[...]
    v = jnp.dot(h, wv_ref[...], preferred_element_type=_F32) + bv_ref[...]
    q_ref[0] = q.astype(_BF16)
    k_ref[0] = k.astype(_BF16)
    v_ref[0] = v.astype(_BF16)


def qkv_proj(x, p, n_head, tkv):
    B, T, C = x.shape
    hd = C // n_head
    weights = [p[k] for k in QKV_WKEYS]
    io_spec = pl.BlockSpec((1, tkv, C), lambda b, t: (b, t, 0))
    cost = pl.CostEstimate(
        flops=int(6 * B * T * C * C),
        transcendentals=int(B * T),  # rsqrt per row
        bytes_accessed=int(B * T * C * 4 + 3 * C * C * 2 + 3 * B * T * C * 2))
    return pl.pallas_call(
        functools.partial(qkv_kernel, scale=1.0 / math.sqrt(hd)),
        out_shape=[jax.ShapeDtypeStruct((B, T, C), _BF16)] * 3,
        grid=(B, T // tkv),
        in_specs=[io_spec] + [_const_spec(w) for w in weights],
        out_specs=[io_spec] * 3,
        compiler_params=pltpu.CompilerParams(
            dimension_semantics=("parallel", "parallel"),
            vmem_limit_bytes=48 * 1024 * 1024),
        cost_estimate=cost,
    )(x, *weights)


# ----------------------- kernel B: causal attention + MLP -----------------------
# grid = (B, T // tq), both axes parallel (query tiles are independent thanks
# to the online softmax over key tiles 0..qi).

def attn_mlp_kernel(x_ref, q_ref, k_ref, v_ref,
                    wo_ref, bo_ref, ln2w_ref, ln2b_ref,
                    wfc_ref, bfc_ref, wfc2_ref, bfc2_ref,
                    o_ref, y_sc, *, n_head, tq):
    C = x_ref.shape[2]
    hd = C // n_head
    qi = pl.program_id(1)
    row0 = qi * tq

    x_q = x_ref[0].astype(_F32)      # (tq, C) residual stream
    q_all = q_ref[0]                 # (tq, C) bf16, scale already folded in

    row_ids = row0 + lax.broadcasted_iota(jnp.int32, (tq, tq), 0)
    col_iota = lax.broadcasted_iota(jnp.int32, (tq, tq), 1)

    # per-head online-softmax attention over causal key tiles 0..qi
    for h in range(n_head):
        sl = slice(h * hd, (h + 1) * hd)
        q_h = q_all[:, sl]                                    # (tq, hd) bf16

        def body(kj, carry, _sl=sl, _q_h=q_h):
            m, l, acc = carry
            kcol0 = pl.multiple_of(kj * tq, tq)
            k_blk = k_ref[0, pl.ds(kcol0, tq), _sl]           # (tq, hd) bf16
            v_blk = v_ref[0, pl.ds(kcol0, tq), _sl]           # (tq, hd) bf16
            s = lax.dot_general(_q_h, k_blk, (((1,), (1,)), ((), ())),
                                preferred_element_type=_F32)  # (tq, tq)
            s = jnp.where(row_ids >= (kcol0 + col_iota), s, _NEG_BIG)
            m_new = jnp.maximum(m, jnp.max(s, axis=-1, keepdims=True))
            alpha = jnp.exp(m - m_new)
            p = jnp.exp(s - m_new)
            l_new = alpha * l + jnp.sum(p, axis=-1, keepdims=True)
            acc_new = alpha * acc + jnp.dot(p.astype(_BF16), v_blk,
                                            preferred_element_type=_F32)
            return m_new, l_new, acc_new

        m0 = jnp.full((tq, 1), _NEG_BIG, _F32)
        l0 = jnp.zeros((tq, 1), _F32)
        acc0 = jnp.zeros((tq, hd), _F32)
        m, l, acc = lax.fori_loop(0, qi + 1, body, (m0, l0, acc0))
        # stage normalized head output at its lane offset (no lane concat)
        y_sc[:, sl] = (acc * pl.reciprocal(l, approx=True)).astype(_BF16)

    # one full-depth (tq, C) @ (C, C) output projection
    attn = jnp.dot(y_sc[...], wo_ref[...], preferred_element_type=_F32) + bo_ref[...]
    x1 = x_q + attn

    # MLP branch
    h2 = _layernorm(x1, ln2w_ref[...], ln2b_ref[...]).astype(_BF16)
    f = jnp.dot(h2, wfc_ref[...], preferred_element_type=_F32) + bfc_ref[...]
    f = _gelu_tanh(f)
    f = jnp.dot(f.astype(_BF16), wfc2_ref[...], preferred_element_type=_F32) + bfc2_ref[...]

    o_ref[0] = (x1 + f).astype(o_ref.dtype)


def attn_mlp(x, q, k, v, p, n_head, tq):
    B, T, C = x.shape
    weights = [p[k] for k in ATTN_WKEYS]
    cost = pl.CostEstimate(
        flops=int(B * (18 * T * C * C + 2 * T * T * C)),
        transcendentals=int(B * (n_head * T * T // 2 + 4 * T * C)),
        bytes_accessed=int(2 * B * T * C * 4 + 3 * B * T * C * 2 + 9 * C * C * 2))
    tile_spec = pl.BlockSpec((1, tq, C), lambda b, qidx: (b, qidx, 0))
    seq_spec = pl.BlockSpec((1, T, C), lambda b, qidx: (b, 0, 0))
    return pl.pallas_call(
        functools.partial(attn_mlp_kernel, n_head=n_head, tq=tq),
        out_shape=jax.ShapeDtypeStruct((B, T, C), x.dtype),
        grid=(B, T // tq),
        in_specs=[tile_spec, tile_spec, seq_spec, seq_spec]
                 + [_const_spec(w) for w in weights],
        out_specs=tile_spec,
        scratch_shapes=[pltpu.VMEM((tq, C), _BF16)],
        compiler_params=pltpu.CompilerParams(
            dimension_semantics=("parallel", "parallel"),
            vmem_limit_bytes=48 * 1024 * 1024),
        cost_estimate=cost,
    )(x, q, k, v, *weights)


def run_block(x, p, n_head, tq, tkv):
    """Apply one transformer Block with the two Pallas kernels."""
    q, k, v = qkv_proj(x, p, n_head, tkv)
    return attn_mlp(x, q, k, v, p, n_head, tq)


# ------------------------------- model wrapper --------------------------------

def init_params(key, *, vocab_size, block_size, n_layer, n_head, n_embd):
    std = 0.02
    C = n_embd
    keys = jax.random.split(key, 2 + 6 * n_layer)
    ki = iter(keys)

    def w(k, shape):
        return (jax.random.normal(k, shape, jnp.float32) * std).astype(_BF16)

    params = {
        "wte": jax.random.normal(next(ki), (vocab_size, C), jnp.float32) * std,
        "wpe": jax.random.normal(next(ki), (block_size, C), jnp.float32) * std,
        "blocks": [],
    }
    for _ in range(n_layer):
        blk = {
            "ln1_w": jnp.ones((1, C), jnp.float32),
            "ln1_b": jnp.zeros((1, C), jnp.float32),
            "wq": w(next(ki), (C, C)), "bq": jnp.zeros((1, C), jnp.float32),
            "wk": w(next(ki), (C, C)), "bk": jnp.zeros((1, C), jnp.float32),
            "wv": w(next(ki), (C, C)), "bv": jnp.zeros((1, C), jnp.float32),
            "wo": w(next(ki), (C, C)), "bo": jnp.zeros((1, C), jnp.float32),
            "ln2_w": jnp.ones((1, C), jnp.float32),
            "ln2_b": jnp.zeros((1, C), jnp.float32),
            "wfc": w(next(ki), (C, 4 * C)), "bfc": jnp.zeros((1, 4 * C), jnp.float32),
            "wfc2": w(next(ki), (4 * C, C)), "bfc2": jnp.zeros((1, C), jnp.float32),
        }
        params["blocks"].append(blk)
    return params


def gpt_forward(params, idx, n_head, seq_tile=None, kv_tile=None):
    """Matches GPT.forward(idx) default path: embeddings -> all blocks -> return x."""
    B, T = idx.shape
    tok_emb = jnp.take(params["wte"], idx, axis=0)        # (B, T, C) -- glue (gather)
    pos_emb = params["wpe"][:T]                           # (T, C)
    x = (tok_emb + pos_emb[None, :, :]).astype(jnp.float32)
    tq = seq_tile if seq_tile is not None else min(T, 128)   # sweep 128/256 on v5e/v6e
    tkv = kv_tile if kv_tile is not None else min(T, 256)
    assert T % tq == 0 and (tq % 8 == 0 or tq == T)
    assert T % tkv == 0 and (tkv % 8 == 0 or tkv == T)
    for blk in params["blocks"]:
        x = run_block(x, blk, n_head, tq, tkv)
    return x


# ------------------------------ pure-JAX reference -----------------------------

def _ref_block(x, p, n_head):
    f32 = jnp.float32

    def ln(v, w, b):
        mu = jnp.mean(v, -1, keepdims=True)
        var = jnp.mean((v - mu) ** 2, -1, keepdims=True)
        return (v - mu) * lax.rsqrt(var + 1e-5) * w + b

    B, T, C = x.shape
    hd = C // n_head
    h = ln(x, p["ln1_w"], p["ln1_b"])
    q = h @ p["wq"].astype(f32) + p["bq"]
    k = h @ p["wk"].astype(f32) + p["bk"]
    v = h @ p["wv"].astype(f32) + p["bv"]
    q = q.reshape(B, T, n_head, hd).transpose(0, 2, 1, 3)
    k = k.reshape(B, T, n_head, hd).transpose(0, 2, 1, 3)
    v = v.reshape(B, T, n_head, hd).transpose(0, 2, 1, 3)
    att = jnp.einsum("bhtd,bhsd->bhts", q, k) / math.sqrt(hd)
    mask = jnp.tril(jnp.ones((T, T), bool))
    att = jnp.where(mask, att, -jnp.inf)
    att = jax.nn.softmax(att, axis=-1)
    y = jnp.einsum("bhts,bhsd->bhtd", att, v).transpose(0, 2, 1, 3).reshape(B, T, C)
    x = x + (y @ p["wo"].astype(f32) + p["bo"])
    h2 = ln(x, p["ln2_w"], p["ln2_b"])
    f = jax.nn.gelu(h2 @ p["wfc"].astype(f32) + p["bfc"], approximate=True)
    return x + (f @ p["wfc2"].astype(f32) + p["bfc2"])


def gpt_forward_ref(params, idx, n_head):
    B, T = idx.shape
    x = jnp.take(params["wte"], idx, axis=0) + params["wpe"][:T][None]
    x = x.astype(jnp.float32)
    for blk in params["blocks"]:
        x = _ref_block(x, blk, n_head)
    return x


# ------------------------------------ main -------------------------------------

if __name__ == "__main__":
    # Small but shape-consistent config (exercises the multi-query-tile path,
    # so the causal key-tiled online softmax runs with >1 key tile).
    vocab_size = 128
    block_size = 32
    n_layer = 2
    n_head = 4
    n_embd = 32
    B, T = 2, 16

    key = jax.random.PRNGKey(0)
    k_param, k_idx = jax.random.split(key)
    params = init_params(k_param, vocab_size=vocab_size, block_size=block_size,
                         n_layer=n_layer, n_head=n_head, n_embd=n_embd)
    idx = jax.random.randint(k_idx, (B, T), 0, vocab_size, dtype=jnp.int32)

    out = gpt_forward(params, idx, n_head, seq_tile=8, kv_tile=16)
    out = jax.block_until_ready(out)

    ref = jax.block_until_ready(gpt_forward_ref(params, idx, n_head))
    np.testing.assert_allclose(np.asarray(out), np.asarray(ref), rtol=5e-2, atol=5e-3)

    print("KERNEL_OK")
</pallas_src>

<mosaic_0001>
module attributes {stable_mosaic.version = 11 : i64} {
  func.func @qkv_kernel(%arg0: i32, %arg1: i32, %arg2: memref<1x16x32xf32, #tpu.memory_space<vmem>>, %arg3: memref<1x32xf32, #tpu.memory_space<vmem>>, %arg4: memref<1x32xf32, #tpu.memory_space<vmem>>, %arg5: memref<32x32xbf16, #tpu.memory_space<vmem>>, %arg6: memref<1x32xf32, #tpu.memory_space<vmem>>, %arg7: memref<32x32xbf16, #tpu.memory_space<vmem>>, %arg8: memref<1x32xf32, #tpu.memory_space<vmem>>, %arg9: memref<32x32xbf16, #tpu.memory_space<vmem>>, %arg10: memref<1x32xf32, #tpu.memory_space<vmem>>, %arg11: memref<1x16x32xbf16, #tpu.memory_space<vmem>>, %arg12: memref<1x16x32xbf16, #tpu.memory_space<vmem>>, %arg13: memref<1x16x32xbf16, #tpu.memory_space<vmem>>) attributes {dimension_semantics = [#tpu.dimension_semantics<parallel>, #tpu.dimension_semantics<parallel>], iteration_bounds = array<i64: 2, 1>, scalar_prefetch = 0 : i64, scratch_operands = 0 : i64, tpu.core_type = #tpu.core_type<tc>, window_params = [{transform_indices = @transform_0, window_bounds = array<i64: 1, 16, 32>}, {pipeline_mode = #tpu.pipeline_mode<synchronous>, transform_indices = @transform_1, window_bounds = array<i64: 1, 32>}, {pipeline_mode = #tpu.pipeline_mode<synchronous>, transform_indices = @transform_2, window_bounds = array<i64: 1, 32>}, {pipeline_mode = #tpu.pipeline_mode<synchronous>, transform_indices = @transform_3, window_bounds = array<i64: 32, 32>}, {pipeline_mode = #tpu.pipeline_mode<synchronous>, transform_indices = @transform_4, window_bounds = array<i64: 1, 32>}, {pipeline_mode = #tpu.pipeline_mode<synchronous>, transform_indices = @transform_5, window_bounds = array<i64: 32, 32>}, {pipeline_mode = #tpu.pipeline_mode<synchronous>, transform_indices = @transform_6, window_bounds = array<i64: 1, 32>}, {pipeline_mode = #tpu.pipeline_mode<synchronous>, transform_indices = @transform_7, window_bounds = array<i64: 32, 32>}, {pipeline_mode = #tpu.pipeline_mode<synchronous>, transform_indices = @transform_8, window_bounds = array<i64: 1, 32>}, {transform_indices = @transform_9, window_bounds = array<i64: 1, 16, 32>}, {transform_indices = @transform_10, window_bounds = array<i64: 1, 16, 32>}, {transform_indices = @transform_11, window_bounds = array<i64: 1, 16, 32>}]} {
    %c0 = arith.constant 0 : index
    %c0_0 = arith.constant 0 : index
    %c0_1 = arith.constant 0 : index
    %0 = vector.load %arg2[%c0, %c0_0, %c0_1] : memref<1x16x32xf32, #tpu.memory_space<vmem>>, vector<1x16x32xf32>
    %1 = vector.shape_cast %0 : vector<1x16x32xf32> to vector<16x32xf32>
    %c0_2 = arith.constant 0 : index
    %c0_3 = arith.constant 0 : index
    %2 = vector.load %arg3[%c0_2, %c0_3] : memref<1x32xf32, #tpu.memory_space<vmem>>, vector<1x32xf32>
    %c0_4 = arith.constant 0 : index
    %c0_5 = arith.constant 0 : index
    %3 = vector.load %arg4[%c0_4, %c0_5] : memref<1x32xf32, #tpu.memory_space<vmem>>, vector<1x32xf32>
    %cst = arith.constant dense<0.000000e+00> : vector<16xf32>
    %4 = vector.multi_reduction <add>, %1, %cst [1] : vector<16x32xf32> to vector<16xf32>
    %5 = vector.shape_cast %4 : vector<16xf32> to vector<16x1xf32>
    %cst_6 = arith.constant 3.200000e+01 : f32
    %6 = vector.broadcast %cst_6 : f32 to vector<16x1xf32>
    %7 = arith.divf %5, %6 : vector<16x1xf32>
    %8 = vector.broadcast %7 : vector<16x1xf32> to vector<16x32xf32>
    %9 = arith.subf %1, %8 : vector<16x32xf32>
    %10 = arith.mulf %9, %9 : vector<16x32xf32>
    %cst_7 = arith.constant dense<0.000000e+00> : vector<16xf32>
    %11 = vector.multi_reduction <add>, %10, %cst_7 [1] : vector<16x32xf32> to vector<16xf32>
    %12 = vector.shape_cast %11 : vector<16xf32> to vector<16x1xf32>
    %cst_8 = arith.constant 3.200000e+01 : f32
    %13 = vector.broadcast %cst_8 : f32 to vector<16x1xf32>
    %14 = arith.divf %12, %13 : vector<16x1xf32>
    %cst_9 = arith.constant 9.99999974E-6 : f32
    %15 = vector.broadcast %cst_9 : f32 to vector<16x1xf32>
    %16 = arith.addf %14, %15 : vector<16x1xf32>
    %17 = math.rsqrt %16 : vector<16x1xf32>
    %18 = vector.broadcast %17 : vector<16x1xf32> to vector<16x32xf32>
    %19 = arith.mulf %9, %18 : vector<16x32xf32>
    %20 = vector.broadcast %2 : vector<1x32xf32> to vector<16x32xf32>
    %21 = arith.mulf %19, %20 : vector<16x32xf32>
    %22 = vector.broadcast %3 : vector<1x32xf32> to vector<16x32xf32>
    %23 = arith.addf %21, %22 : vector<16x32xf32>
    %24 = arith.truncf %23 : vector<16x32xf32> to vector<16x32xbf16>
    %c0_10 = arith.constant 0 : index
    %c0_11 = arith.constant 0 : index
    %25 = vector.load %arg5[%c0_10, %c0_11] : memref<32x32xbf16, #tpu.memory_space<vmem>>, vector<32x32xbf16>
    %cst_12 = arith.constant dense<0.000000e+00> : vector<16x32xf32>
    %26 = tpu.matmul %24, %25, %cst_12 {dimension_numbers = #tpu.dot_dimension_numbers<[1], [0], [0], [1], [0, 0, 1, 1], [], []>} : vector<16x32xbf16>, vector<32x32xbf16>, vector<16x32xf32> -> vector<16x32xf32>
    %c0_13 = arith.constant 0 : index
    %c0_14 = arith.constant 0 : index
    %27 = vector.load %arg6[%c0_13, %c0_14] : memref<1x32xf32, #tpu.memory_space<vmem>>, vector<1x32xf32>
    %28 = vector.broadcast %27 : vector<1x32xf32> to vector<16x32xf32>
    %29 = arith.addf %26, %28 : vector<16x32xf32>
    %cst_15 = arith.constant 0.353553385 : f32
    %30 = vector.broadcast %cst_15 : f32 to vector<16x32xf32>
    %31 = arith.mulf %29, %30 : vector<16x32xf32>
    %c0_16 = arith.constant 0 : index
    %c0_17 = arith.constant 0 : index
    %32 = vector.load %arg7[%c0_16, %c0_17] : memref<32x32xbf16, #tpu.memory_space<vmem>>, vector<32x32xbf16>
    %cst_18 = arith.constant dense<0.000000e+00> : vector<16x32xf32>
    %33 = tpu.matmul %24, %32, %cst_18 {dimension_numbers = #tpu.dot_dimension_numbers<[1], [0], [0], [1], [0, 0, 1, 1], [], []>} : vector<16x32xbf16>, vector<32x32xbf16>, vector<16x32xf32> -> vector<16x32xf32>
    %c0_19 = arith.constant 0 : index
    %c0_20 = arith.constant 0 : index
    %34 = vector.load %arg8[%c0_19, %c0_20] : memref<1x32xf32, #tpu.memory_space<vmem>>, vector<1x32xf32>
    %35 = vector.broadcast %34 : vector<1x32xf32> to vector<16x32xf32>
    %36 = arith.addf %33, %35 : vector<16x32xf32>
    %c0_21 = arith.constant 0 : index
    %c0_22 = arith.constant 0 : index
    %37 = vector.load %arg9[%c0_21, %c0_22] : memref<32x32xbf16, #tpu.memory_space<vmem>>, vector<32x32xbf16>
    %cst_23 = arith.constant dense<0.000000e+00> : vector<16x32xf32>
    %38 = tpu.matmul %24, %37, %cst_23 {dimension_numbers = #tpu.dot_dimension_numbers<[1], [0], [0], [1], [0, 0, 1, 1], [], []>} : vector<16x32xbf16>, vector<32x32xbf16>, vector<16x32xf32> -> vector<16x32xf32>
    %c0_24 = arith.constant 0 : index
    %c0_25 = arith.constant 0 : index
    %39 = vector.load %arg10[%c0_24, %c0_25] : memref<1x32xf32, #tpu.memory_space<vmem>>, vector<1x32xf32>
    %40 = vector.broadcast %39 : vector<1x32xf32> to vector<16x32xf32>
    %41 = arith.addf %38, %40 : vector<16x32xf32>
    %42 = arith.truncf %31 : vector<16x32xf32> to vector<16x32xbf16>
    %c0_26 = arith.constant 0 : index
    %c0_27 = arith.constant 0 : index
    %c0_28 = arith.constant 0 : index
    %43 = vector.load %arg11[%c0_26, %c0_27, %c0_28] : memref<1x16x32xbf16, #tpu.memory_space<vmem>>, vector<1x16x32xbf16>
    %44 = vector.shape_cast %43 : vector<1x16x32xbf16> to vector<16x32xbf16>
    %45 = vector.shape_cast %42 : vector<16x32xbf16> to vector<1x16x32xbf16>
    tpu.vector_store %arg11[%c0_26, %c0_27, %c0_28], %45 {strides = array<i32>} : memref<1x16x32xbf16, #tpu.memory_space<vmem>>, vector<1x16x32xbf16>,
    %46 = arith.truncf %36 : vector<16x32xf32> to vector<16x32xbf16>
    %c0_29 = arith.constant 0 : index
    %c0_30 = arith.constant 0 : index
    %c0_31 = arith.constant 0 : index
    %47 = vector.load %arg12[%c0_29, %c0_30, %c0_31] : memref<1x16x32xbf16, #tpu.memory_space<vmem>>, vector<1x16x32xbf16>
    %48 = vector.shape_cast %47 : vector<1x16x32xbf16> to vector<16x32xbf16>
    %49 = vector.shape_cast %46 : vector<16x32xbf16> to vector<1x16x32xbf16>
    tpu.vector_store %arg12[%c0_29, %c0_30, %c0_31], %49 {strides = array<i32>} : memref<1x16x32xbf16, #tpu.memory_space<vmem>>, vector<1x16x32xbf16>,
    %50 = arith.truncf %41 : vector<16x32xf32> to vector<16x32xbf16>
    %c0_32 = arith.constant 0 : index
    %c0_33 = arith.constant 0 : index
    %c0_34 = arith.constant 0 : index
    %51 = vector.load %arg13[%c0_32, %c0_33, %c0_34] : memref<1x16x32xbf16, #tpu.memory_space<vmem>>, vector<1x16x32xbf16>
    %52 = vector.shape_cast %51 : vector<1x16x32xbf16> to vector<16x32xbf16>
    %53 = vector.shape_cast %50 : vector<16x32xbf16> to vector<1x16x32xbf16>
    tpu.vector_store %arg13[%c0_32, %c0_33, %c0_34], %53 {strides = array<i32>} : memref<1x16x32xbf16, #tpu.memory_space<vmem>>, vector<1x16x32xbf16>,
    return
  }
  func.func @transform_0(%arg0: i32, %arg1: i32) -> (i32, i32, i32) {
    %c0_i32 = arith.constant 0 : i32
    %c0_i32_0 = arith.constant 0 : i32
    return %arg0, %arg1, %c0_i32 : i32, i32, i32
  }
  func.func @transform_1(%arg0: i32, %arg1: i32) -> (i32, i32) {
    %c0_i32 = arith.constant 0 : i32
    %c0_i32_0 = arith.constant 0 : i32
    %c0_i32_1 = arith.constant 0 : i32
    return %c0_i32, %c0_i32_0 : i32, i32
  }
  func.func @transform_2(%arg0: i32, %arg1: i32) -> (i32, i32) {
    %c0_i32 = arith.constant 0 : i32
    %c0_i32_0 = arith.constant 0 : i32
    %c0_i32_1 = arith.constant 0 : i32
    return %c0_i32, %c0_i32_0 : i32, i32
  }
  func.func @transform_3(%arg0: i32, %arg1: i32) -> (i32, i32) {
    %c0_i32 = arith.constant 0 : i32
    %c0_i32_0 = arith.constant 0 : i32
    %c0_i32_1 = arith.constant 0 : i32
    return %c0_i32, %c0_i32_0 : i32, i32
  }
  func.func @transform_4(%arg0: i32, %arg1: i32) -> (i32, i32) {
    %c0_i32 = arith.constant 0 : i32
    %c0_i32_0 = arith.constant 0 : i32
    %c0_i32_1 = arith.constant 0 : i32
    return %c0_i32, %c0_i32_0 : i32, i32
  }
  func.func @transform_5(%arg0: i32, %arg1: i32) -> (i32, i32) {
    %c0_i32 = arith.constant 0 : i32
    %c0_i32_0 = arith.constant 0 : i32
    %c0_i32_1 = arith.constant 0 : i32
    return %c0_i32, %c0_i32_0 : i32, i32
  }
  func.func @transform_6(%arg0: i32, %arg1: i32) -> (i32, i32) {
    %c0_i32 = arith.constant 0 : i32
    %c0_i32_0 = arith.constant 0 : i32
    %c0_i32_1 = arith.constant 0 : i32
    return %c0_i32, %c0_i32_0 : i32, i32
  }
  func.func @transform_7(%arg0: i32, %arg1: i32) -> (i32, i32) {
    %c0_i32 = arith.constant 0 : i32
    %c0_i32_0 = arith.constant 0 : i32
    %c0_i32_1 = arith.constant 0 : i32
    return %c0_i32, %c0_i32_0 : i32, i32
  }
  func.func @transform_8(%arg0: i32, %arg1: i32) -> (i32, i32) {
    %c0_i32 = arith.constant 0 : i32
    %c0_i32_0 = arith.constant 0 : i32
    %c0_i32_1 = arith.constant 0 : i32
    return %c0_i32, %c0_i32_0 : i32, i32
  }
  func.func @transform_9(%arg0: i32, %arg1: i32) -> (i32, i32, i32) {
    %c0_i32 = arith.constant 0 : i32
    %c0_i32_0 = arith.constant 0 : i32
    return %arg0, %arg1, %c0_i32 : i32, i32, i32
  }
  func.func @transform_10(%arg0: i32, %arg1: i32) -> (i32, i32, i32) {
    %c0_i32 = arith.constant 0 : i32
    %c0_i32_0 = arith.constant 0 : i32
    return %arg0, %arg1, %c0_i32 : i32, i32, i32
  }
  func.func @transform_11(%arg0: i32, %arg1: i32) -> (i32, i32, i32) {
    %c0_i32 = arith.constant 0 : i32
    %c0_i32_0 = arith.constant 0 : i32
    return %arg0, %arg1, %c0_i32 : i32, i32, i32
  }
}

</mosaic_0001>

<bundles_post_ra>
// kernel: tpu_custom_call.1
= control target key start
LH: loop header
LB: loop body
LE: loop exit
PB: predicated region body
PF: predicated region fallthrough
CT: control target
= control target key end

     0   :  { %s1880_s0 = inlined_call_operand.hbm [shape: f32[2,16,32], index: 0, kind: input, shape index: {}]   ;;  %s1881_s1 = inlined_call_operand.vmem [shape: f32[1,32], index: 1, kind: input, shape index: {}]   ;;  %s1882_s2 = inlined_call_operand.vmem [shape: f32[1,32], index: 2, kind: input, shape index: {}]   ;;  %s1883_s3 = inlined_call_operand.hbm [shape: bf16[32,32], index: 3, kind: input, shape index: {}]   ;;  %s1884_s4 = inlined_call_operand.vmem [shape: f32[1,32], index: 4, kind: input, shape index: {}]   ;;  %s1885_s5 = inlined_call_operand.hbm [shape: bf16[32,32], index: 5, kind: input, shape index: {}]   ;;  %s1886_s6 = inlined_call_operand.vmem [shape: f32[1,32], index: 6, kind: input, shape index: {}]   ;;  %s1887_s7 = inlined_call_operand.hbm [shape: bf16[32,32], index: 7, kind: input, shape index: {}]   ;;  %s1888_s8 = inlined_call_operand.vmem [shape: f32[1,32], index: 8, kind: input, shape index: {}]   ;;  %s1889_s9 = inlined_call_operand.hbm [shape: bf16[2,16,32], index: 9, kind: output, shape index: {0}]   ;;  %s1890_s10 = inlined_call_operand.hbm [shape: bf16[2,16,32], index: 10, kind: output, shape index: {1}]   ;;  %s1891_s11 = inlined_call_operand.hbm [shape: bf16[2,16,32], index: 11, kind: output, shape index: {2}]  }
   0x1   :  { %1899 = sst [smem:[#allocation22_spill]] %s1880_s0 }
   0x2   :  { %1900 = sst [smem:[#allocation23_spill]] %s1883_s3 }
   0x3   :  { %1901 = sst [smem:[#allocation24_spill]] %s1885_s5 }
   0x4   :  { %1902 = sst [smem:[#allocation25_spill]] %s1887_s7 }
   0x5   :  { %1903 = sst [smem:[#allocation26_spill]] %s1891_s11 }
   0x6   :  { %17 = vsyncpa [#allocation3], 0 }
   0x7   :  { %19 = vsyncpa [#allocation3 + $0x1], 0 }
   0x8   :  { %20 = vsyncpa [#allocation6], 0 }
   0x9   :  { %21 = vsyncpa [#allocation9], 0 }
   0xa   :  { %22 = vsyncpa [#allocation4], 0 }
   0xb   :  { %24 = vsyncpa [#allocation4 + $0x1], 0 }
   0xc   :  { %25 = vsyncpa [#allocation12], 0 }
   0xd   :  { %27 = vsyncpa [#allocation12 + $0x1], 0  ;;  %s1556_s17 = smov 0   ;;  %s1558_s18 = smov 0  }
   0xe   :  { %s1560_s19 = smov 0   ;;  %s1562_s20 = smov 0  }
   0xf   :  { %s1564_s21 = smov 0   ;;  %s1566_s22 = smov 0  }
  0x10 LB: > { %1904 = sst [smem:[#allocation19_spill]] %s1459_s17  ;;  %s1587_s23 = sadd.s32 4294967295, %s1479_s22   ;;  %s1479_s22 = sphi %s1566_s22, %s33_s22   ;;  %s1475_s21 = sphi %s1564_s21, %s1934_s21   ;;  %s1471_s20 = sphi %s1562_s20, %s1933_s20   ;;  %s1467_s19 = sphi %s1560_s19, %s1932_s19   ;;  %s1463_s18 = sphi %s1558_s18, %s1931_s18   ;;  %s1459_s17 = sphi %s1556_s17, %s1930_s17  }
  0x11   : > { %s1892_s24 = sadd.s32 4294967294, %s1479_s22   ;;  %p67_p0 = scmp.ne.s32.totalorder %s1463_s18, %s1459_s17 }
  0x12   : > { %p1894_p1 = scmp.eq.s32.totalorder %s1587_s23, 0  ;;  %p267_p3 = scmp.eq.s32.totalorder %s1892_s24, 1 }
  0x13   : > { %p1018_p5 = scmp.ge.s32.totalorder %s1479_s22, 1  ;;  %p330_p7 = scmp.lt.s32.totalorder %s1479_s22, 3 }
  0x14   : > { %p1598_p4 = por %p1894_p1, %p67_p0  ;;  %p1603_p6 = por %p267_p3, %p67_p0 }
  0x15   : > { %p1608_p8 = pnand %p1018_p5, %p330_p7  ;;  %s1481_s28 = smov [#allocation5]  }
  0x16   : > { %s1905_s25 = scalar_select %p1598_p4, 1, 0 }
  0x17   : > { %s1906_s26 = scalar_select %p1603_p6, 1, 0 }
  0x18   : > { %s348_s29 = sshll.u32 %s1481_s28, 4  ;;  %p1128_p9 = pneg %p1608_p8  ;;  %s349_s29 = int_to_ptr.vmem [resolvable:$true] %s348_s29 }
  0x19   : > { %1907 = sst [smem:[#allocation20_spill]] %s1906_s26  ;;  %s1482_s12 = smov [#allocation7]  }
  0x1a   : > { %p1617_p11 = pnand %p1128_p9, %p1894_p1  ;;  %s364_s13 = sshll.u32 %s1482_s12, 4  ;;  %s365_s13 = int_to_ptr.vmem [resolvable:$true] %s364_s13 }
  0x1b   : > { %s1483_s14 = smov [#allocation8]   ;;  %s1240_s16 = scalar_lea.vmem %s349_s29, 256 }
  0x1c   : > { %s380_s15 = sshll.u32 %s1483_s14, 4  ;;  %p1231_p12 = pneg %p1617_p11  ;;  %s381_s15 = int_to_ptr.vmem [resolvable:$true] %s380_s15 }
  0x1d   : > { %p1241_p13 = scmp.ne.s32.totalorder %s349_s29, %s1240_s16  ;;  %p1248_p5 = scmp.lt.s32.totalorder %s349_s29, %s349_s29 }
  0x1e   : > { %p1249_p7 = scmp.lt.s32.totalorder %s1240_s16, %s1240_s16 }
  0x1f   : > { %p1243_p0 = pnand %p1241_p13, %p1231_p12 }
  0x20   : > { %p1250_p9 = por %p1249_p7, %p1248_p5 }
  0x21   : > { %p1244_p3 = pneg %p1243_p0 }
  0x23   : > { %p1251_p10 = pnand %p1250_p9, %p1244_p3 }
  0x25   : > { %1254 = shalt.err (!%p1251_p10)
}
  0x26   : > { %s1484_s28 = smov 64   ;;  %s1485_s12 = smov 4  }
  0x27   : > { %s1910_s3 = sld [smem:[#allocation23_spill]]  ;;  %s1266_s26 = scalar_lea.vmem %s365_s13, 256 }
  0x28   : > { %p1267_p1 = scmp.ne.s32.totalorder %s365_s13, %s1266_s26  ;;  %p1274_p2 = scmp.lt.s32.totalorder %s365_s13, %s365_s13 }
  0x29   : > { %p1275_p6 = scmp.lt.s32.totalorder %s1266_s26, %s1266_s26 }
  0x2a   : > { %p1269_p13 = pnand %p1267_p1, %p1231_p12 }
  0x2b   : > { %p1276_p5 = por %p1275_p6, %p1274_p2 }
  0x2c   : > { %p1270_p0 = pneg %p1269_p13 }
  0x2d   : > { %1131 = dma.hbm_to_vmem [thread:$0]  (!%p1617_p11), %s1910_s3, 256, %s349_s29, [#allocation6], %s1484_s28, %s1484_s28, %s1485_s12  }
  0x2e   : > { %p1277_p3 = pnand %p1276_p5, %p1270_p0 }
  0x30   : > { %1280 = shalt.err (!%p1277_p3)
}
  0x31   : > { %s1911_s5 = sld [smem:[#allocation24_spill]]  ;;  %s1292_s24 = scalar_lea.vmem %s381_s15, 256 }
  0x32   : > { %p1293_p10 = scmp.ne.s32.totalorder %s381_s15, %s1292_s24  ;;  %p1300_p9 = scmp.lt.s32.totalorder %s381_s15, %s381_s15 }
  0x33   : > { %p1301_p13 = scmp.lt.s32.totalorder %s1292_s24, %s1292_s24 }
  0x34   : > { %p1295_p7 = pnand %p1293_p10, %p1231_p12 }
  0x35   : > { %p1302_p4 = por %p1301_p13, %p1300_p9 }
  0x36   : > { %p1296_p1 = pneg %p1295_p7 }
  0x37   : > { %1134 = dma.hbm_to_vmem [thread:$0]  (!%p1617_p11), %s1911_s5, 256, %s365_s13, [#allocation6], %s1484_s28, %s1484_s28, %s1485_s12  }
  0x38   : > { %p1303_p2 = pnand %p1302_p4, %p1296_p1 }
  0x3a   : > { %1306 = shalt.err (!%p1303_p2)
}
  0x3b   : > { %s1912_s7 = sld [smem:[#allocation25_spill]]  ;;  %s54_s17 = sadd.s32 1, %s1467_s19 }
  0x3c   : > { %s45_s13 = sadd.s32 1, %s1475_s21  ;;  %p61_p4 = scmp.ne.s32.totalorder %s1467_s19, %s1463_s18 }
  0x3d   : > { %p47_p6 = scmp.ge.s32.totalorder %s45_s13, 2  ;;  %p62_p12 = scmp.eq.s32.totalorder %s1479_s22, 0 }
  0x3e   : > { %p1913_p0 = scmp.eq.s32.totalorder %s1587_s23, 1  ;;  %p1155_p3 = scmp.lt.s32.totalorder %s1479_s22, 2 }
  0x3f   : > { %s1936_s13 = smov (%p47_p6, %s45_s13), 0  ;;  %p63_p10 = por %p62_p12, %p61_p4 }
  0x40   : > { %p1654_p5 = por %p1913_p0, %p61_p4  ;;  %1915 = sst [smem:[#allocation21_spill]] %s1936_s13 }
  0x41   : > { %1137 = dma.hbm_to_vmem [thread:$0]  (!%p1617_p11), %s1912_s7, 256, %s381_s15, [#allocation9], %s1484_s28, %s1484_s28, %s1485_s12  }
  0x42   : > { %s397_s14 = sand.u32 1, %s1467_s19   ;;  %s49_s16 = ssub.s32 %s1475_s21, %s1936_s13 }
  0x43   : > { %p52_p7 = scmp.eq.s32.totalorder %s49_s16, 0  ;;  %s1023_s15 = sshll.u32 %s397_s14, 4 }
  0x44   : > { %s1065_s28 = sshll.u32 %s1475_s21, 8  ;;  %s1916_s0 = sld [smem:[#allocation22_spill]] }
  0x45   : > { %s1666_s12 = scalar_select %p52_p7, %s1467_s19, %s54_s17  }
  0x46   : > { %s401_s3 = scalar_lea.vmem [#allocation2], %s1023_s15  ;;  %p1673_p11 = pnand %p1155_p3, %p63_p10 }
  0x47   : > { %s410_s5 = sshll.u32 %s401_s3, 4  ;;  %s398_s11 = scalar_lea.sflag [#allocation3], %s397_s14  ;;  %s411_s5 = int_to_ptr.vmem [resolvable:$true] %s410_s5 }
  0x48   : > { %p1309_p1 = pneg %p1673_p11  ;;  %s1320_s16 = scalar_lea.vmem %s411_s5, 256 }
  0x49   : > { %p1321_p9 = scmp.ne.s32.totalorder %s411_s5, %s1320_s16  ;;  %s1486_s17 = smov [#allocation2]  }
  0x4a   : > { %s409_s29 = scalar_lea.hbm %s1916_s0, %s1065_s28  ;;  %s1325_s13 = sshll.u32 %s1486_s17, 4  ;;  %s1326_s13 = int_to_ptr.vmem [resolvable:$false] %s1325_s13 }
  0x4b   : > { %p1323_p13 = pnand %p1321_p9, %p1309_p1  ;;  %s1327_s28 = scalar_lea.vmem %s1326_s13, 512 }
  0x4c   : > { %p1328_p4 = scmp.lt.s32.totalorder %s411_s5, %s1326_s13  ;;  %p1329_p6 = scmp.lt.s32.totalorder %s1327_s28, %s1320_s16 }
  0x4d   : > { %p1324_p2 = pneg %p1323_p13 }
  0x4e   : > { %p1330_p12 = por %p1329_p6, %p1328_p4 }
  0x50   : > { %p1331_p0 = pnand %p1330_p12, %p1324_p2 }
  0x52   : > { %1334 = shalt.err (!%p1331_p0)
}
  0x53   : > { %s1487_s3 = smov 128   ;;  %s1488_s15 = smov 8  }
  0x54   : > { %1141 = dma.hbm_to_vmem [thread:$0]  (!%p1673_p11), %s409_s29, 256, %s411_s5, %s398_s11, %s1487_s3, %s1487_s3, %s1488_s15  }
  0x55   : > { %422 = sbr.rel (%p1608_p8) target bundleno = 679 (0x2a7), region = 56  ;;  %s1684_s14 = sand.u32 (!%p1608_p8), 1, %s1463_s18  }
  0x56   : > { %s1027_s24 = sshll.u32 (!%p1608_p8), %s1684_s14, 4  ;;  %s425_s13 = scalar_lea.sflag (!%p1608_p8), [#allocation3], %s1684_s14 }
  0x57   : > { %s428_s26 = scalar_lea.vmem (!%p1608_p8), [#allocation2], %s1027_s24  ;;  %p1918_p3 = scmp.ne.s32.totalorder (!%p1608_p8), %s1905_s25, 0 }
  0x5a   : > { %1438 = dma.done.wait (%p1918_p3), %s425_s13, 256  }
  0x5b   : > { %1440 = vsyncadd (%p1918_p3), %s425_s13, 4294967040  ;;  %p1919_p10 = scmp.eq.s32.totalorder %s1587_s23, 0 }
  0x5d   : > { %1442 = dma.done.wait (%p1919_p10), [#allocation6], 512   ;;  %p1920_p7 = pmov %p1919_p10 }
  0x5f   : > { %1444 = vsyncadd (%p1920_p7), [#allocation6], 4294966784  ;;  %p1921_p8 = pmov %p1920_p7 }
  0x60   : > { %p1922_p11 = pmov %p1920_p7 }
  0x61   : > { %1446 = dma.done.wait (%p1921_p8), [#allocation9], 256  }
  0x62   : > { %1448 = vsyncadd (%p1922_p11), [#allocation9], 4294967040  ;;  %vm498_vm0 = vcmask 261120   ;;  %v494_v0 = vld [vmem:[%s428_s26] sm:$0xff]  ;;  %v495_v1 = vld [vmem:[%s428_s26 + $0x8] sm:$0xff]  ;;  %v1489_v16 = vmov 0.0  }
  0x63   : > { %v499_v2 = vsel %vm498_vm0, %v494_v0, 0.0  ;;  %v502_v3 = vsel %vm498_vm0, %v495_v1, 0.0  ;;  %v1219_v14 = vld [vmem:[#allocation5 + $0x8] sm:$0xff]   ;;  %v1220_v15 = vld [vmem:[#allocation7 + $0x8] sm:$0xff]   ;;  %1084 = vmatprep.subr.bf16.mxu0 %v1489_v16  ;;  %1092 = vmatprep.subr.bf16.mxu1 %v1489_v16  ;;  %v1221_v17 = vld [vmem:[#allocation5] sm:$0xff]   ;;  %vm1490_vm1 = vmmov 0  }
  0x64   : > { %500 = vadd.xlane.f32.xlu0 %v499_v2  ;;  %1085 = vmatpush3.bf16.msra.mxu0 %v1219_v14  ;;  %v1222_v18 = vld [vmem:[#allocation7] sm:$0xff]   ;;  %v1034_v27 = vld [vmem:[%s1881_s1] ss:$0 sm:$0xff]  ;;  %v1223_v35 = vld [vmem:[#allocation8 + $0x8] sm:$0xff]   ;;  %s1723_s28 = sshll.u32 %s1684_s14, 3  ;;  %vm748_vm2 = vcmask 257024  }
  0x65   : > { %1093 = vmatpush3.bf16.msra.mxu1 %v1220_v15  ;;  %1086 = vmatprep.subr.bf16.mxu0 %v1489_v16  ;;  %v1035_v31 = vld [vmem:[%s1882_s2] ss:$0 sm:$0xff]  ;;  %s776_s3 = sand.u32 1, %s1587_s23   ;;  %s481_s15 = scalar_lea.vmem [#allocation11], %s1723_s28 }
  0x66   : > { %1094 = vmatprep.subr.bf16.mxu1 %v1489_v16  ;;  %1088 = vmatprep.mubr.msk.bf16.mxu0 %vm1490_vm1, %v1489_v16  ;;  %v1224_v37 = vld [vmem:[#allocation8] sm:$0xff]   ;;  %s815_s24 = sshll.u32 %s481_s15, 4  ;;  %s1728_s13 = sshll.u32 %s1471_s20, 7  ;;  %s1748_s24 = int_to_ptr.vmem [resolvable:$true] %s815_s24 }
  0x67   : > { %1096 = vmatprep.mubr.msk.bf16.mxu1 %vm1490_vm1, %v1489_v16  ;;  %v1036_v38 = vld [vmem:[%s1884_s4] ss:$0 sm:$0xff]  ;;  %s1737_s23 = scalar_lea.vmem [#allocation10], %s1723_s28  ;;  %s1746_s25 = scalar_lea.hbm %s1890_s10, %s1728_s13 }
  0x68   : > { %503 = vadd.xlane.f32.xlu0 %v502_v3  ;;  %1087 = vmatpush3.bf16.msra.mxu0 %v1221_v17  ;;  %v1040_v39 = vld [vmem:[%s1886_s6] ss:$0 sm:$0xff]  ;;  %s797_s20 = sshll.u32 %s1737_s23, 4  ;;  %s1756_s16 = scalar_lea.hbm %s1889_s9, %s1728_s13  ;;  %s1758_s20 = int_to_ptr.vmem [resolvable:$true] %s797_s20 }
  0x69   : > { %1095 = vmatpush3.bf16.msra.mxu1 %v1222_v18  ;;  %1100 = vmatprep.subr.bf16.mxu0 %v1489_v16  ;;  %v1734_v55 = vld [vmem:[%s1888_s8] ss:$0 sm:$0xff]  ;;  %s1760_s17 = scalar_lea.sflag [#allocation12], %s776_s3  ;;  %s1335_s26 = scalar_lea.vmem %s1748_s24, 128 }
  0x6a   : > { %p1336_p1 = scmp.ne.s32.totalorder %s1748_s24, %s1335_s26  ;;  %s1491_s5 = smov [#allocation11]  }
  0x6b   : > { %s1339_s7 = sshll.u32 %s1491_s5, 4  ;;  %s1340_s7 = int_to_ptr.vmem [resolvable:$false] %s1339_s7 }
  0x6c   : > { %p1337_p9 = pnand %p1336_p1, %p1654_p5  ;;  %p1342_p2 = scmp.lt.s32.totalorder %s1748_s24, %s1340_s7 }
  0x6e   : > { %p1338_p13 = pneg %p1337_p9 }
  0xed   : > { %v501_v4 = vpop.xlane.xlu0 %500 }
  0xee   : > { %v506_v5 = vmul.f32 0.03125, %v501_v4 }
  0xf0   : > { %v508_v6 = vsub.f32 %v494_v0, %v506_v5 }
  0xf1   : > { %v504_v7 = vpop.xlane.xlu0 %503 }
  0xf2   : > { %v507_v8 = vmul.f32 0.03125, %v504_v7  ;;  %v510_v9 = vmul.f32 %v508_v6, %v508_v6 }
  0xf4   : > { %v509_v10 = vsub.f32 %v495_v1, %v507_v8  ;;  %v512_v11 = vsel %vm498_vm0, %v510_v9, 0.0 }
  0xf5   : > { %513 = vadd.xlane.f32.xlu1 %v512_v11 }
  0xf6   : > { %v511_v12 = vmul.f32 %v509_v10, %v509_v10 }
  0xf8   : > { %v515_v13 = vsel %vm498_vm0, %v511_v12, 0.0 }
  0xf9   : > { %516 = vadd.xlane.f32.xlu1 %v515_v13 }
 0x17e   : > { %v514_v19 = vpop.xlane.xlu1 %513 }
 0x17f   : > { %v518_v20 = vmul.f32 0.03125, %v514_v19 }
 0x181   : > { %v520_v21 = vadd.f32 1e-05, %v518_v20 }
 0x182   : > { %v517_v22 = vpop.xlane.xlu1 %516 }
 0x183   : > { %1225 = vrsqrt.f32 %v520_v21  ;;  %v519_v23 = vmul.f32 0.03125, %v517_v22 }
 0x185   : > { %v521_v24 = vadd.f32 1e-05, %v519_v23 }
 0x187   : > { %1227 = vrsqrt.f32 %v521_v24 }
 0x190   : > { %v1226_v25 = vpop.eup %1225 }
 0x191   : > { %v524_v26 = vmul.f32 %v1226_v25, %v508_v6 }
 0x193   : > { %v532_v30 = vmul.f32 %v1034_v27, %v524_v26 }
 0x194   : > { %v1228_v28 = vpop.eup %1227 }
 0x195   : > { %v525_v29 = vmul.f32 %v1228_v28, %v509_v10  ;;  %v540_v33 = vadd.f32 %v1035_v31, %v532_v30 }
 0x197   : > { %v533_v32 = vmul.f32 %v1034_v27, %v525_v29 }
 0x199   : > { %v541_v34 = vadd.f32 %v1035_v31, %v533_v32 }
 0x19b   : > { %v542_v36 = vpack.c.bf16 %v541_v34, %v540_v33 }
 0x19d   : > { %1089 = vmatmul.mubr.msk.bf16.vlgmr.msra.gmra.mxu0 %vm498_vm0, %v542_v36  ;;  %1097 = vmatmul.mubr.msk.bf16.vlgmr.msra.gmra.mxu1 %vm498_vm0, %v542_v36 }
 0x19e   : > { %1101 = vmatpush3.bf16.msra.mxu0 %v1223_v35  ;;  %1104 = vmatprep.mubr.msk.bf16.mxu0 %vm1490_vm1, %v1489_v16 }
 0x19f   : > { %1102 = vmatprep.subr.bf16.mxu0 %v1489_v16 }
 0x1a2   : > { %1103 = vmatpush3.bf16.msra.mxu0 %v1224_v37 }
 0x1a5   : > { %1105 = vmatmul.mubr.msk.bf16.vlgmr.msra.gmra.mxu0 %vm498_vm0, %v542_v36 }
 0x25d   : > { %v603_v40 = vpop.f32.mrf.mxu0  ;;  %v669_v41 = vpop.f32.mrf.mxu1 }
 0x25e   : > { %v604_v42 = vadd.f32 %v1036_v38, %v603_v40  ;;  %v670_v43 = vadd.f32 %v1040_v39, %v669_v41 }
 0x25f   : > { %v1090_v44 = vpop.f32.mrf.mxu0  ;;  %v1098_v45 = vpop.f32.mrf.mxu1 }
 0x260   : > { %v610_v46 = vmul.f32 0.35355338, %v604_v42  ;;  %v1068_v47 = vpack.c.bf16 %v670_v43, %v670_v43 }
 0x261   : > { %v606_v48 = vpop.f32.mrf.mxu0  ;;  %v672_v49 = vpop.f32.mrf.mxu1 }
 0x262   : > { %v1066_v50 = vpack.c.bf16 %v610_v46, %v610_v46  ;;  %759 = vst.msk [vmem:[%s481_s15] sm:$0xf] %vm748_vm2, %v1068_v47  ;;  %v607_v51 = vadd.f32 %v1036_v38, %v606_v48  ;;  %v673_v52 = vadd.f32 %v1040_v39, %v672_v49 }
 0x263   : > { %v1091_v53 = vpop.f32.mrf.mxu0  ;;  %v1099_v54 = vpop.f32.mrf.mxu1 }
 0x264   : > { %749 = vst.msk [vmem:[%s1737_s23] sm:$0xf] %vm748_vm2, %v1066_v50  ;;  %v611_v56 = vmul.f32 0.35355338, %v607_v51  ;;  %v1069_v57 = vpack.c.bf16 %v673_v52, %v673_v52 }
 0x265   : > { %v733_v58 = vpop.f32.mrf.mxu0 }
 0x266   : > { %v1067_v59 = vpack.c.bf16 %v611_v56, %v611_v56  ;;  %760 = vst.msk [vmem:[%s481_s15 + $0x4] sm:$0xf] %vm748_vm2, %v1069_v57  ;;  %v734_v60 = vadd.f32 %v1734_v55, %v733_v58  ;;  %s1341_s15 = scalar_lea.vmem %s1340_s7, 256 }
 0x267   : > { %v1106_v61 = vpop.f32.mrf.mxu0  ;;  %p1343_p4 = scmp.lt.s32.totalorder %s1341_s15, %s1335_s26 }
 0x269   : > { %p1344_p6 = por %p1343_p4, %p1342_p2 }
 0x26b   : > { %p1345_p12 = pnand %p1344_p6, %p1338_p13 }
 0x26d   : > { %1348 = shalt.err (!%p1345_p12)
}
 0x26e   : > { %s1349_s3 = scalar_lea.hbm %s1746_s25, 128  ;;  %s1353_s29 = scalar_lea.hbm %s1890_s10, 256 }
 0x26f   : > { %p1350_p0 = scmp.ne.s32.totalorder %s1746_s25, %s1349_s3  ;;  %p1354_p7 = scmp.lt.s32.totalorder %s1746_s25, %s1890_s10 }
 0x270   : > { %p1355_p8 = scmp.lt.s32.totalorder %s1353_s29, %s1349_s3 }
 0x271   : > { %p1351_p3 = pnand %p1350_p0, %p1654_p5 }
 0x272   : > { %p1356_p11 = por %p1355_p8, %p1354_p7 }
 0x273   : > { %p1352_p10 = pneg %p1351_p3 }
 0x275   : > { %p1357_p1 = pnand %p1356_p11, %p1352_p10 }
 0x277   : > { %1360 = shalt.err (!%p1357_p1)
}
 0x278   : > { %s1492_s26 = smov 64   ;;  %s1493_s7 = smov 4   ;;  %750 = vst.msk [vmem:[%s1737_s23 + $0x4] sm:$0xf] %vm748_vm2, %v1067_v59  ;;  %v1070_v62 = vpack.c.bf16 %v734_v60, %v734_v60  ;;  %v736_v63 = vpop.f32.mrf.mxu0 }
 0x279   : > { %1123 = dma.vmem_to_hbm [thread:$0]  (%p1654_p5), %s1748_s24, 128, %s1746_s25, %s1760_s17, %s1492_s26, %s1492_s26, %s1493_s7  }
 0x27a   : > { %s1789_s0 = scalar_lea.vmem [#allocation13], %s1723_s28  ;;  %s772_s3 = scalar_lea.sflag [#allocation4], %s1684_s14 }
 0x27b   : > { %s833_s15 = sshll.u32 %s1789_s0, 4  ;;  %s1361_s11 = scalar_lea.vmem %s1758_s20, 128  ;;  %s1821_s15 = int_to_ptr.vmem [resolvable:$true] %s833_s15 }
 0x27c   : > { %p1362_p9 = scmp.ne.s32.totalorder %s1758_s20, %s1361_s11  ;;  %s1494_s27 = smov [#allocation10]  }
 0x27d   : > { %s1365_s29 = sshll.u32 %s1494_s27, 4  ;;  %s1366_s29 = int_to_ptr.vmem [resolvable:$false] %s1365_s29 }
 0x27e   : > { %p1363_p13 = pnand %p1362_p9, %p1654_p5  ;;  %s1367_s5 = scalar_lea.vmem %s1366_s29, 256 }
 0x27f   : > { %p1368_p4 = scmp.lt.s32.totalorder %s1758_s20, %s1366_s29  ;;  %p1369_p6 = scmp.lt.s32.totalorder %s1367_s5, %s1361_s11 }
 0x280   : > { %p1364_p2 = pneg %p1363_p13 }
 0x281   : > { %p1370_p12 = por %p1369_p6, %p1368_p4 }
 0x283   : > { %p1371_p0 = pnand %p1370_p12, %p1364_p2 }
 0x285   : > { %1374 = shalt.err (!%p1371_p0)
}
 0x286   : > { %s1375_s28 = scalar_lea.hbm %s1756_s16, 128  ;;  %s1379_s23 = scalar_lea.hbm %s1889_s9, 256 }
 0x287   : > { %p1376_p3 = scmp.ne.s32.totalorder %s1756_s16, %s1375_s28  ;;  %p1380_p8 = scmp.lt.s32.totalorder %s1756_s16, %s1889_s9 }
 0x288   : > { %p1381_p11 = scmp.lt.s32.totalorder %s1379_s23, %s1375_s28 }
 0x289   : > { %p1377_p10 = pnand %p1376_p3, %p1654_p5 }
 0x28a   : > { %p1382_p1 = por %p1381_p11, %p1380_p8 }
 0x28b   : > { %p1378_p7 = pneg %p1377_p10 }
 0x28d   : > { %p1383_p9 = pnand %p1382_p1, %p1378_p7 }
 0x28f   : > { %1386 = shalt.err (!%p1383_p9)
}
 0x290   : > { %1122 = dma.vmem_to_hbm [thread:$0]  (%p1654_p5), %s1758_s20, 128, %s1756_s16, %s772_s3, %s1492_s26, %s1492_s26, %s1493_s7   ;;  %v737_v0 = vadd.f32 %v1734_v55, %v736_v63  ;;  %v1107_v1 = vpop.f32.mrf.mxu0 }
 0x291   : > { %769 = vst.msk [vmem:[%s1789_s0] sm:$0xf] %vm748_vm2, %v1070_v62  ;;  %s1923_s5 = sld [smem:[#allocation26_spill]]  ;;  %s1387_s20 = scalar_lea.vmem %s1821_s15, 128 }
 0x292   : > { %v1071_v2 = vpack.c.bf16 %v737_v0, %v737_v0  ;;  %p1388_p13 = scmp.ne.s32.totalorder %s1821_s15, %s1387_s20  ;;  %s1495_s16 = smov [#allocation13]  }
 0x293   : > { %s1391_s3 = sshll.u32 %s1495_s16, 4  ;;  %s1392_s3 = int_to_ptr.vmem [resolvable:$false] %s1391_s3 }
 0x294   : > { %770 = vst.msk [vmem:[%s1789_s0 + $0x4] sm:$0xf] %vm748_vm2, %v1071_v2  ;;  %p1389_p2 = pnand %p1388_p13, %p1654_p5  ;;  %s1393_s14 = scalar_lea.vmem %s1392_s3, 256 }
 0x295   : > { %p1394_p6 = scmp.lt.s32.totalorder %s1821_s15, %s1392_s3  ;;  %p1395_p12 = scmp.lt.s32.totalorder %s1393_s14, %s1387_s20 }
 0x296   : > { %p1390_p4 = pneg %p1389_p2 }
 0x297   : > { %s1827_s28 = scalar_lea.hbm %s1923_s5, %s1728_s13  ;;  %p1396_p0 = por %p1395_p12, %p1394_p6 }
 0x299   : > { %p1397_p3 = pnand %p1396_p0, %p1390_p4 }
 0x29b   : > { %1400 = shalt.err (!%p1397_p3)
}
 0x29c   : > { %s1401_s13 = scalar_lea.hbm %s1827_s28, 128  ;;  %s1405_s23 = scalar_lea.hbm %s1923_s5, 256 }
 0x29d   : > { %p1402_p10 = scmp.ne.s32.totalorder %s1827_s28, %s1401_s13  ;;  %p1406_p11 = scmp.lt.s32.totalorder %s1827_s28, %s1923_s5 }
 0x29e   : > { %p1407_p1 = scmp.lt.s32.totalorder %s1405_s23, %s1401_s13 }
 0x29f   : > { %p1403_p7 = pnand %p1402_p10, %p1654_p5 }
 0x2a0   : > { %p1408_p9 = por %p1407_p1, %p1406_p11 }
 0x2a1   : > { %p1404_p8 = pneg %p1403_p7 }
 0x2a3   : > { %p1409_p13 = pnand %p1408_p9, %p1404_p8 }
 0x2a5   : > { %1412 = shalt.err (!%p1409_p13)
}
 0x2a6   : > { %1124 = dma.vmem_to_hbm [thread:$0]  (%p1654_p5), %s1821_s15, 128, %s1827_s28, %s1760_s17, %s1492_s26, %s1492_s26, %s1493_s7  }
 0x2a7 PF: > { %s1924_s11 = sld [smem:[#allocation19_spill]]  ;;  %p1927_p4 = scmp.ge.s32.totalorder %s1479_s22, 2 }
 0x2a8   : > { %s1925_s29 = sld [smem:[#allocation20_spill]] }
 0x2ad   : > { %s848_s20 = sand.u32 1, %s1924_s11  }
 0x2ae   : > { %p1926_p2 = scmp.ne.s32.totalorder %s1925_s29, 0  ;;  %s849_s16 = scalar_lea.sflag [#allocation4], %s848_s20 }
 0x2b0   : > { %p1143_p6 = pnand %p1927_p4, %p1926_p2 }
 0x2b2   : > { %p1144_p12 = pneg %p1143_p6 }
 0x2b4   : > { %1450 = dma.done.wait (%p1144_p12), %s849_s16, 128  }
 0x2b5   : > { %1452 = vsyncadd (%p1144_p12), %s849_s16, 4294967168  ;;  %s1928_s30 = sadd.s32 4294967294, %s1479_s22  }
 0x2b6   : > { %s857_s3 = sand.u32 1, %s1928_s30  }
 0x2b7   : > { %s858_s14 = scalar_lea.sflag [#allocation12], %s857_s3 }
 0x2b8   : > { %1454 = dma.done.wait (%p1144_p12), %s858_s14, 256  }
 0x2b9   : > { %1456 = vsyncadd (%p1144_p12), %s858_s14, 4294967040  ;;  %s33_s22 = sadd.s32 1, %s1479_s22   ;;  %s1929_s26 = sld [smem:[#allocation21_spill]] }
 0x2ba   : > { %p30_p5 = scmp.ge.s32.totalorder %s33_s22, 4   ;;  %s1930_s17 = smov %s1463_s18 }
 0x2bb   : > { %s1931_s18 = smov %s1467_s19  ;;  %s1932_s19 = smov %s1666_s12 }
 0x2bc   : > { %s1933_s20 = smov %s1475_s21  ;;  %32 = sbr.rel (!%p30_p5) target bundleno = 16 (0x10), region = 145 }
 0x2bf   : > { %s1934_s21 = smov %s1929_s26 }
 0x2c1   :  { %872 = vsyncpa [#allocation3], 1 }
 0x2c2   :  { %874 = vsyncpa [#allocation3 + $0x1], 1 }
 0x2c3   :  { %875 = vsyncpa [#allocation6], 1 }
 0x2c4   :  { %876 = vsyncpa [#allocation9], 1 }
 0x2c5   :  { %877 = vsyncpa [#allocation4], 1 }
 0x2c6   :  { %879 = vsyncpa [#allocation4 + $0x1], 1 }
 0x2c7   :  { %880 = vsyncpa [#allocation12], 1 }
 0x2c8   :  { %882 = vsyncpa [#allocation12 + $0x1], 1 }

</bundles_post_ra>
